<compile_context>
chip_gen: v7x
topology: tpu7x:2x2x1
jax: 0.10.0
libtpu: 0.0.40
codegen_flags: <defaults>
</compile_context>

<pallas_src>
import jax
import jax.numpy as jnp
from jax.experimental import pallas as pl
from jax.experimental.pallas import tpu as pltpu

_LANE = 128


def _round_up(x, m):
    return ((x + m - 1) // m) * m


# --------------------------------------------------------------------------
# Pallas kernel: fused  relu(w @ x + b)  on one (batch, spatial-tile) block.
# Spatial axis is the lane dim; Cout sits in sublanes.
# --------------------------------------------------------------------------
def _conv1x1_relu_kernel(x_ref, w_ref, b_ref, o_ref):
    # x_ref: (Cin, TM)   activation tile (bf16/f32), lane dim = spatial
    # w_ref: (Cout, Cin) weights (constant across the grid, fetched once)
    # b_ref: (Cout, 1)   f32 bias
    # o_ref: (Cout, TM)  output tile, lane dim = spatial
    y = jnp.dot(w_ref[...], x_ref[...], preferred_element_type=jnp.float32)
    y = y + b_ref[...]                       # f32 bias add (lane broadcast)
    o_ref[...] = jnp.maximum(y, 0.0).astype(o_ref.dtype)


def _choose_tm(HW, N, Cin, Cout, x_itemsize, out_itemsize, tm_target):
    """Lane-dense spatial tile size (multiple of 128), VMEM- and core-aware."""
    # Per-lane VMEM footprint: double-buffered input + double-buffered output
    # + f32 matmul/epilogue intermediate.  Weights/bias are negligible.
    per_lane_bytes = 2 * Cin * x_itemsize + 2 * Cout * out_itemsize + Cout * 4
    vmem_budget = 16 * 1024 * 1024      # < half of the 32 MiB scoped default on all gens
    tm_vmem = max(_LANE, (vmem_budget // per_lane_bytes) // _LANE * _LANE)

    tm = min(_round_up(tm_target, _LANE), _round_up(HW, _LANE), tm_vmem)

    # v7x has 2 TensorCores: make sure the "parallel" grid has >= 2 steps.
    if N < 2 and HW > _LANE:
        tm = min(tm, _round_up(pl.cdiv(HW, 2), _LANE))
    return tm


def _pallas_conv1x1_relu(x3d, w, b, *, tm_target=65536):
    """x3d: (N, Cin, HW); w: (Cout, Cin); b: (Cout, 1) f32 -> (N, Cout, HW)."""
    N, Cin, HW = x3d.shape
    Cout = w.shape[0]
    out_dtype = x3d.dtype
    out_itemsize = jnp.dtype(out_dtype).itemsize

    tm = _choose_tm(HW, N, Cin, Cout, x3d.dtype.itemsize, out_itemsize, tm_target)
    grid = (N, pl.cdiv(HW, tm))          # tail block clipped by Pallas, no pad/slice

    cost = pl.CostEstimate(
        flops=2 * N * HW * Cin * Cout,
        transcendentals=0,
        bytes_accessed=(N * Cin * HW * x3d.dtype.itemsize
                        + Cout * Cin * w.dtype.itemsize
                        + Cout * b.dtype.itemsize
                        + N * Cout * HW * out_itemsize),
    )

    return pl.pallas_call(
        _conv1x1_relu_kernel,
        out_shape=jax.ShapeDtypeStruct((N, Cout, HW), out_dtype),
        grid_spec=pltpu.PrefetchScalarGridSpec(
            num_scalar_prefetch=0,
            grid=grid,
            in_specs=[
                pl.BlockSpec((None, Cin, tm), lambda n, s: (n, 0, s)),
                pl.BlockSpec((Cout, Cin), lambda n, s: (0, 0)),
                pl.BlockSpec((Cout, 1), lambda n, s: (0, 0)),
            ],
            out_specs=pl.BlockSpec((None, Cout, tm), lambda n, s: (n, 0, s)),
        ),
        compiler_params=pltpu.CompilerParams(
            dimension_semantics=("parallel", "parallel"),
        ),
        cost_estimate=cost,
    )(x3d, w, b)


# --------------------------------------------------------------------------
# Synthetic inner model (stands in for the arbitrary `model` argument).
# 1x1 conv (NCHW) + bias + ReLU, hot path in Pallas, no layout transposes.
# --------------------------------------------------------------------------
class SyntheticConv1x1Model:
    def __init__(self, c_in, c_out, key, *, param_dtype=jnp.bfloat16):
        kw, kb = jax.random.split(key)
        scale = 1.0 / jnp.sqrt(jnp.float32(c_in))
        # Stored as (Cout, Cin) in the activation dtype so the kernel
        # consumes it directly as the matmul LHS (no per-call casts).
        self.w = (jax.random.normal(kw, (c_out, c_in), jnp.float32)
                  * scale).astype(param_dtype)
        # f32 bias, already shaped (Cout, 1) for the lane-broadcast add.
        self.b = jax.random.normal(kb, (c_out, 1), jnp.float32) * 0.1
        self.c_in = c_in
        self.c_out = c_out

    def __call__(self, x_nchw):
        n, c, h, w = x_nchw.shape
        assert c == self.c_in
        assert x_nchw.dtype == self.w.dtype
        # NCHW stays NCHW: merging trailing H,W axes is a free reshape; the
        # spatial axis becomes the lane dim of every kernel tile.
        x3d = x_nchw.reshape(n, c, h * w)
        y3d = _pallas_conv1x1_relu(x3d, self.w, self.b)
        return y3d.reshape(n, self.c_out, h, w)


# --------------------------------------------------------------------------
# `Base` wrapper — exact semantics of the PyTorch module.
# --------------------------------------------------------------------------
class Base:
    def __init__(self, cfg, model):
        self.cfg = cfg
        self.model = model

    def forward(self, x):
        return self.model(x)

    def __call__(self, x):
        return self.forward(x)

    def post_forward(self, input, output):
        return output

    def feature_res_adj(self, x):
        return x


# TODO(synk): the original `self.model` is an arbitrary external nn.Module
# supplied by the caller; it is replaced here by a deterministic synthetic
# Pallas-backed 1x1-conv model since no concrete architecture is specified.

if __name__ == "__main__":
    key = jax.random.PRNGKey(0)
    k_x, k_m = jax.random.split(key)

    N, C, H, W = 2, 4, 16, 16   # small NCHW input consistent with conv usage
    C_OUT = 8

    # bf16 activations (halves HBM bytes, MXU-native path).
    x = jax.random.normal(k_x, (N, C, H, W), jnp.float32).astype(jnp.bfloat16)

    model = SyntheticConv1x1Model(C, C_OUT, k_m)
    base = Base(cfg=None, model=model)

    out = base(x)                      # Base.forward -> model (Pallas kernel)
    out = base.post_forward(x, out)    # identity
    out = base.feature_res_adj(out)    # identity
    jax.block_until_ready(out)

    # Pure-JAX f32 reference computed from the same bf16 operands.
    xf = x.astype(jnp.float32).reshape(N, C, H * W)
    wf = model.w.astype(jnp.float32)
    ref = jnp.maximum(jnp.einsum("oc,ncm->nom", wf, xf) + model.b[None, :, :], 0.0)
    ref = ref.reshape(N, C_OUT, H, W)

    assert out.shape == (N, C_OUT, H, W)
    assert out.dtype == jnp.bfloat16
    assert jnp.allclose(out.astype(jnp.float32), ref, atol=5e-2, rtol=5e-2)

    print("KERNEL_OK")
</pallas_src>

<mosaic_0001>
module attributes {stable_mosaic.version = 11 : i64} {
  func.func @_conv1x1_relu_kernel(%arg0: i32, %arg1: i32, %arg2: memref<1x4x256xbf16, #tpu.memory_space<vmem>>, %arg3: memref<8x4xbf16, #tpu.memory_space<vmem>>, %arg4: memref<8x1xf32, #tpu.memory_space<vmem>>, %arg5: memref<1x8x256xbf16, #tpu.memory_space<vmem>>) attributes {dimension_semantics = [#tpu.dimension_semantics<parallel>, #tpu.dimension_semantics<parallel>], iteration_bounds = array<i64: 2, 1>, scalar_prefetch = 0 : i64, scratch_operands = 0 : i64, tpu.core_type = #tpu.core_type<tc>, window_params = [{transform_indices = @transform_0, window_bounds = array<i64: 1, 4, 256>}, {pipeline_mode = #tpu.pipeline_mode<synchronous>, transform_indices = @transform_1, window_bounds = array<i64: 8, 4>}, {pipeline_mode = #tpu.pipeline_mode<synchronous>, transform_indices = @transform_2, window_bounds = array<i64: 8, 1>}, {transform_indices = @transform_3, window_bounds = array<i64: 1, 8, 256>}]} {
    %c0 = arith.constant 0 : index
    %c0_0 = arith.constant 0 : index
    %0 = vector.load %arg3[%c0, %c0_0] : memref<8x4xbf16, #tpu.memory_space<vmem>>, vector<8x4xbf16>
    %c0_1 = arith.constant 0 : index
    %c0_2 = arith.constant 0 : index
    %c0_3 = arith.constant 0 : index
    %1 = vector.load %arg2[%c0_1, %c0_2, %c0_3] : memref<1x4x256xbf16, #tpu.memory_space<vmem>>, vector<1x4x256xbf16>
    %2 = vector.shape_cast %1 : vector<1x4x256xbf16> to vector<4x256xbf16>
    %cst = arith.constant dense<0.000000e+00> : vector<8x256xf32>
    %3 = tpu.matmul %0, %2, %cst {dimension_numbers = #tpu.dot_dimension_numbers<[1], [0], [0], [1], [0, 0, 1, 1], [], []>} : vector<8x4xbf16>, vector<4x256xbf16>, vector<8x256xf32> -> vector<8x256xf32>
    %c0_4 = arith.constant 0 : index
    %c0_5 = arith.constant 0 : index
    %4 = vector.load %arg4[%c0_4, %c0_5] : memref<8x1xf32, #tpu.memory_space<vmem>>, vector<8x1xf32>
    %5 = vector.broadcast %4 : vector<8x1xf32> to vector<8x256xf32>
    %6 = arith.addf %3, %5 : vector<8x256xf32>
    %cst_6 = arith.constant 0.000000e+00 : f32
    %7 = vector.broadcast %cst_6 : f32 to vector<8x256xf32>
    %8 = arith.maximumf %6, %7 : vector<8x256xf32>
    %9 = arith.truncf %8 : vector<8x256xf32> to vector<8x256xbf16>
    %c0_7 = arith.constant 0 : index
    %c0_8 = arith.constant 0 : index
    %c0_9 = arith.constant 0 : index
    %10 = vector.load %arg5[%c0_7, %c0_8, %c0_9] : memref<1x8x256xbf16, #tpu.memory_space<vmem>>, vector<1x8x256xbf16>
    %11 = vector.shape_cast %10 : vector<1x8x256xbf16> to vector<8x256xbf16>
    %12 = vector.shape_cast %9 : vector<8x256xbf16> to vector<1x8x256xbf16>
    tpu.vector_store %arg5[%c0_7, %c0_8, %c0_9], %12 {strides = array<i32>} : memref<1x8x256xbf16, #tpu.memory_space<vmem>>, vector<1x8x256xbf16>,
    return
  }
  func.func @transform_0(%arg0: i32, %arg1: i32) -> (i32, i32, i32) {
    %c0_i32 = arith.constant 0 : i32
    %c0_i32_0 = arith.constant 0 : i32
    return %arg0, %c0_i32, %arg1 : i32, i32, i32
  }
  func.func @transform_1(%arg0: i32, %arg1: i32) -> (i32, i32) {
    %c0_i32 = arith.constant 0 : i32
    %c0_i32_0 = arith.constant 0 : i32
    %c0_i32_1 = arith.constant 0 : i32
    return %c0_i32, %c0_i32_0 : i32, i32
  }
  func.func @transform_2(%arg0: i32, %arg1: i32) -> (i32, i32) {
    %c0_i32 = arith.constant 0 : i32
    %c0_i32_0 = arith.constant 0 : i32
    %c0_i32_1 = arith.constant 0 : i32
    return %c0_i32, %c0_i32_0 : i32, i32
  }
  func.func @transform_3(%arg0: i32, %arg1: i32) -> (i32, i32, i32) {
    %c0_i32 = arith.constant 0 : i32
    %c0_i32_0 = arith.constant 0 : i32
    return %arg0, %c0_i32, %arg1 : i32, i32, i32
  }
}

</mosaic_0001>

<bundles_post_ra>
// kernel: tpu_custom_call.1
= control target key start
LH: loop header
LB: loop body
LE: loop exit
PB: predicated region body
PF: predicated region fallthrough
CT: control target
= control target key end

     0   :  { %8 = vsyncpa [#allocation3], 0  ;;  %s671_s0 = inlined_call_operand.vmem [shape: bf16[2,4,256], index: 0, kind: input, shape index: {}]   ;;  %s672_s1 = inlined_call_operand.vmem [shape: bf16[8,4], index: 1, kind: input, shape index: {}]   ;;  %s673_s2 = inlined_call_operand.vmem [shape: f32[8,1], index: 2, kind: input, shape index: {}]   ;;  %s674_s3 = inlined_call_operand.hbm [shape: bf16[2,8,256], index: 3, kind: output, shape index: {}]  }
   0x1   :  { %10 = vsyncpa [#allocation3 + $0x1], 0  ;;  %s553_s12 = smov 0   ;;  %s555_s13 = smov 0  }
   0x2   :  { %s557_s14 = smov 0   ;;  %s559_s15 = smov 0  }
   0x3   :  { %s561_s16 = smov 0   ;;  %s563_s17 = smov 0  }
   0x4 LB: > { %s374_s18 = sadd.s32 4294967295, %s529_s17   ;;  %s375_s19 = sadd.s32 4294967294, %s529_s17   ;;  %s529_s17 = sphi %s563_s17, %s16_s17   ;;  %s525_s16 = sphi %s561_s16, %s681_s16   ;;  %s521_s15 = sphi %s559_s15, %s680_s15   ;;  %s517_s14 = sphi %s557_s14, %s679_s14   ;;  %s513_s13 = sphi %s555_s13, %s678_s13   ;;  %s509_s12 = sphi %s553_s12, %s677_s12  }
   0x5   : > { %s28_s20 = sadd.s32 1, %s525_s16  ;;  %s107_s21 = sadd.s32 1, %s517_s14 }
   0x6   : > { %p30_p0 = scmp.ge.s32.totalorder %s28_s20, 2  ;;  %p117_p1 = scmp.ne.s32.totalorder %s517_s14, %s513_s13 }
   0x7   : > { %p118_p2 = scmp.eq.s32.totalorder %s374_s18, 1  ;;  %p123_p3 = scmp.ne.s32.totalorder %s513_s13, %s509_s12 }
   0x8   : > { %s683_s20 = smov (%p30_p0, %s28_s20), 0  ;;  %p124_p5 = scmp.eq.s32.totalorder %s375_s19, 1 }
   0x9   : > { %p593_p4 = por %p118_p2, %p117_p1  ;;  %s102_s23 = ssub.s32 %s525_s16, %s683_s20 }
   0xa   : > { %p378_p6 = scmp.ge.s32.totalorder %s529_s17, 1  ;;  %p105_p7 = scmp.eq.s32.totalorder %s102_s23, 0 }
   0xb   : > { %p600_p8 = por %p124_p5, %p123_p3  ;;  %p161_p9 = scmp.lt.s32.totalorder %s529_s17, 3 }
   0xc   : > { %s606_s25 = scalar_select %p105_p7, %s517_s14, %s107_s21  }
   0xd   : > { %p162_p10 = pnand %p378_p6, %p161_p9 }
   0xe   : > { %p190_p11 = scmp.lt.s32.totalorder (!%p162_p10), %s521_s15, 1  ;;  %v531_v0 = vmov (!%p162_p10), 0   ;;  %v203_v1 = vld [vmem:[%s673_s2] sm:$0xff] (!%p162_p10)  ;;  %vm222_vm0 = vcmask (!%p162_p10), 1041408   ;;  %vm218_vm1 = vcmask (!%p162_p10), 31744   ;;  %s186_s8 = sand.u32 (!%p162_p10), 1, %s513_s13  }
   0xf   : > { %165 = sbr.rel (%p162_p10) target bundleno = 266 (0x10a), region = 32  ;;  %261 = vmatprep.mubr.bf16.mxu0 (!%p162_p10), %v531_v0  ;;  %450 = vset.pattern.permute.xlu0 (!%p162_p10), %v531_v0  ;;  %v201_v5 = vld [vmem:[%s672_s1] sm:$0xf] (!%p162_p10)  ;;  %s379_s9 = sshll.u32 (!%p162_p10), %s186_s8, 3 }
  0x10   : > { %206 = vperm.xlu0 (!%p162_p10), %450, %v203_v1   ;;  %s393_s10 = sshll.u32 (!%p162_p10), %s521_s15, 7  ;;  %s188_s11 = scalar_lea.vmem (!%p162_p10), [#allocation2], %s379_s9 }
  0x11   : > { %s298_s18 = sshll.u32 (!%p162_p10), %s188_s11, 4  ;;  %s624_s23 = scalar_lea.hbm (!%p162_p10), %s674_s3, %s393_s10  ;;  %s626_s18 = int_to_ptr.vmem [resolvable:$true] %s298_s18 }
  0x12   : > { %s282_s26 = scalar_lea.sflag (!%p162_p10), [#allocation3], %s186_s8  ;;  %s451_s27 = scalar_lea.vmem (!%p162_p10), %s626_s18, 128 }
  0x13   : > { %p452_p12 = scmp.ne.s32.totalorder (!%p162_p10), %s626_s18, %s451_s27 }
  0x15   : > { %p453_p13 = pnand (!%p162_p10), %p452_p12, %p593_p4 }
  0x16   : > { %s191_s28 = scalar_select %p190_p11, %s521_s15, 1 }
  0x17   : > { %p454_p0 = pneg %p453_p13  ;;  %s532_s15 = smov [#allocation2]  }
  0x18   : > { %s391_s29 = sshll.u32 %s191_s28, 2  ;;  %s455_s28 = sshll.u32 %s532_s15, 4  ;;  %s456_s28 = int_to_ptr.vmem [resolvable:$false] %s455_s28 }
  0x19   : > { %s197_s5 = scalar_lea.vmem %s671_s0, %s391_s29  ;;  %s457_s29 = scalar_lea.vmem %s456_s28, 256 }
  0x1a   : > { %v382_v2 = vld.sshfl [vmem:[%s197_s5] sm:$0x33 pattern:$0x76325410]  ;;  %p458_p1 = scmp.lt.s32.totalorder %s626_s18, %s456_s28  ;;  %p459_p2 = scmp.lt.s32.totalorder %s457_s29, %s451_s27 }
  0x1b   : > { %v217_v3 = vcombine.high %v382_v2, %v382_v2  ;;  %v224_v4 = vsel %vm222_vm0, %v382_v2, 0 }
  0x1c   : > { %p460_p3 = por %p459_p2, %p458_p1 }
  0x1d   : > { %383 = vmatprep.subr.msk.bf16.mxu0 %vm222_vm0, %v217_v3 }
  0x1e   : > { %230 = vmatpush1.bf16.msra.mxu0 %v224_v4  ;;  %p461_p5 = pnand %p460_p3, %p454_p0 }
  0x21   : > { %384 = vmatmul.mubr.msk.bf16.vlgmr.msra.gmra.mrb[0].mxu0 %vm218_vm1, %v201_v5 }
  0x8f   : > { %v207_v6 = vpop.permute.xlu0 %206 }
  0xf4   : > { %v263_v7 = vpop.f32.mrb[0].mxu0 }
  0xf5   : > { %v264_v8 = vadd.f32 %v263_v7, %v207_v6  ;;  %v265_v9 = vpop.f32.mrb[1].mxu0 }
  0xf6   : > { %v266_v10 = vadd.f32 %v265_v9, %v207_v6  ;;  %v267_v11 = vpop.f32.mrb[2].mxu0 }
  0xf7   : > { %v270_v12 = vmax.f32 %v264_v8, 0.0  ;;  %v268_v13 = vpop.f32.mrb[3].mxu0 }
  0xf8   : > { %v271_v14 = vmax.f32 %v266_v10, 0.0 }
  0xfa   : > { %v392_v15 = vpack.c.bf16 %v271_v14, %v270_v12 }
  0xfc   : > { %280 = vst [vmem:[%s188_s11] sm:$0xff] %v392_v15 }
  0xfd   : > { %464 = shalt.err (!%p461_p5)
}
  0xfe   : > { %s465_s30 = scalar_lea.hbm %s624_s23, 128  ;;  %s469_s6 = scalar_lea.hbm %s674_s3, 256 }
  0xff   : > { %p466_p6 = scmp.ne.s32.totalorder %s624_s23, %s465_s30  ;;  %p470_p10 = scmp.lt.u32.totalorder %s624_s23, %s674_s3 }
 0x100   : > { %p471_p11 = scmp.lt.u32.totalorder %s469_s6, %s465_s30  ;;  %p473_p13 = scmp.lt.u32.totalorder %s465_s30, %s624_s23 }
 0x101   : > { %p467_p7 = pnand %p466_p6, %p593_p4 }
 0x102   : > { %p472_p12 = por %p471_p11, %p470_p10 }
 0x103   : > { %p468_p9 = pneg %p467_p7 }
 0x104   : > { %p474_p0 = por %p473_p13, %p472_p12 }
 0x106   : > { %p475_p1 = pnand %p474_p0, %p468_p9 }
 0x108   : > { %478 = shalt.err (!%p475_p1)
}
 0x109   : > { %394 = dma.vmem_to_hbm [thread:$0]  (%p593_p4), %s626_s18, 128, %s624_s23, %s282_s26  }
 0x10a PF: > { %p400_p2 = scmp.ge.s32.totalorder %s529_s17, 2  ;;  %s310_s9 = sand.u32 1, %s509_s12  }
 0x10b   : > { %s311_s10 = scalar_lea.sflag [#allocation3], %s310_s9 }
 0x10c   : > { %p397_p3 = pnand %p400_p2, %p600_p8 }
 0x10e   : > { %504 = dma.done.wait (!%p397_p3), %s311_s10, 128  }
 0x10f   : > { %506 = vsyncadd (!%p397_p3), %s311_s10, 4294967168  ;;  %s16_s17 = sadd.s32 1, %s529_s17   ;;  %s677_s12 = smov %s513_s13 }
 0x110   : > { %p13_p5 = scmp.ge.s32.totalorder %s16_s17, 4   ;;  %s678_s13 = smov %s517_s14 }
 0x111   : > { %s679_s14 = smov %s606_s25  ;;  %s680_s15 = smov %s525_s16 }
 0x112   : > { %s681_s16 = smov %s683_s20  ;;  %15 = sbr.rel (!%p13_p5) target bundleno = 4 (0x4), region = 67 }
 0x119   :  { %316 = vsyncpa [#allocation3], 1 }
 0x11a   :  { %318 = vsyncpa [#allocation3 + $0x1], 1 }

</bundles_post_ra>
